<compile_context>
chip_gen: v7x
topology: tpu7x:2x2x1
jax: 0.10.0
libtpu: 0.0.40
codegen_flags: <defaults>
</compile_context>

<pallas_src>
import functools

import jax
import jax.numpy as jnp
from jax.experimental import pallas as pl
from jax.experimental.pallas import tpu as pltpu

MIN_VAR = 0.1


def _softplus(x):
    # numerically-stable softplus: max(x, 0) + log(1 + exp(-|x|))
    return jnp.maximum(x, 0.0) + jnp.log(1.0 + jnp.exp(-jnp.abs(x)))


def _huber(x):
    # F.huber_loss(x, 0, reduction='none'), delta = 1.0
    ax = jnp.abs(x)
    return jnp.where(ax < 1.0, 0.5 * x * x, ax - 0.5)


def _smooth_abs(x):
    return jnp.sqrt(x * x + 0.001)


_OUTPUT_FNS = {"softplus": _softplus, "huber_loss": _huber, "smooth_abs": _smooth_abs}


def _round_up(x, m):
    return ((x + m - 1) // m) * m


def _quncertainty_kernel(output_fn, in_p, hid, num_layers, small_rows,
                         x_ref, p_ref, o_ref):
    # Packed-parameter layout (every row has `hid` lanes):
    #   row 0                    : w3  (head weight row)
    #   row 1                    : [b3, 0, ..., 0]
    #   rows 2 .. 2+num_layers-1 : biases of the hidden Linears
    #   rows small_rows ..       : w1 (in_p, hid), then (num_layers-1) x (hid, hid)
    w3_row = p_ref[0:1, :]
    b3 = p_ref[1:2, 0:1]

    off = small_rows
    # layer 1: Linear(in_size -> hid) + ReLU   (MXU)
    h = jnp.dot(x_ref[...], p_ref[off:off + in_p, :],
                preferred_element_type=jnp.float32)
    h = jnp.maximum(h + p_ref[2:3, :], 0.0)
    off += in_p
    # hidden layers 2..num_layers: Linear(hid -> hid) + ReLU (MXU, static unroll)
    for l in range(num_layers - 1):
        h = jnp.dot(h, p_ref[off:off + hid, :], preferred_element_type=jnp.float32)
        h = jnp.maximum(h + p_ref[3 + l:4 + l, :], 0.0)
        off += hid
    # head Linear(hid -> 1): VPU multiply + lane reduction
    out = jnp.sum(h * w3_row, axis=-1, keepdims=True) + b3
    # output_fn + min_var folded into the kernel as constants
    o_ref[...] = _OUTPUT_FNS[output_fn](out) + MIN_VAR


def quncertainty_forward(obs_action, packed, meta, output_fn="softplus",
                         block_b=512):
    """obs_action: (B, in_size) f32.  packed/meta from pack_params()."""
    B, in_size = obs_action.shape
    assert in_size == meta["in_size"]
    in_p, hid = meta["in_p"], meta["hid"]
    num_layers, small_rows = meta["num_layers"], meta["small_rows"]

    # Pad features to the packed w1 row count (multiple of 8 sublanes).
    if in_p != in_size:
        obs_action = jnp.pad(obs_action, ((0, 0), (0, in_p - in_size)))

    # Batch tile: multiple of 8 sublanes, capped at block_b.
    tb = min(block_b, _round_up(B, 8))
    Bp = _round_up(B, tb)
    if Bp != B:
        obs_action = jnp.pad(obs_action, ((0, Bp - B), (0, 0)))
    grid = (Bp // tb,)

    kernel = functools.partial(_quncertainty_kernel, output_fn, in_p, hid,
                               num_layers, small_rows)
    out = pl.pallas_call(
        kernel,
        out_shape=jax.ShapeDtypeStruct((Bp, 1), jnp.float32),
        grid=grid,
        in_specs=[
            pl.BlockSpec((tb, in_p), lambda i: (i, 0)),     # activations: pipelined
            pl.BlockSpec(packed.shape, lambda i: (0, 0)),   # all params: single DMA, resident
        ],
        out_specs=pl.BlockSpec((tb, 1), lambda i: (i, 0)),
        compiler_params=pltpu.CompilerParams(
            dimension_semantics=("parallel",)),             # v7x: shard batch across TCs
    )(obs_action, packed)
    return out[:B]


def init_params(key, in_size, hid_size, num_layers=2):
    """Deterministic init mirroring weights_init_: orthogonal W, zero bias."""
    keys = jax.random.split(key, num_layers + 1)
    ortho = jax.nn.initializers.orthogonal(scale=1.0)
    # PyTorch Linear weight is (out, in); orthogonal_ on that shape, then
    # transpose hidden weights to (in, out) for the x @ W convention.
    w1 = ortho(keys[0], (hid_size, in_size), jnp.float32).T
    w_hid = [ortho(keys[1 + l], (hid_size, hid_size), jnp.float32).T
             for l in range(num_layers - 1)]
    w3 = ortho(keys[num_layers], (1, hid_size), jnp.float32)   # head row (1, hid)
    biases = [jnp.zeros((hid_size,), jnp.float32) for _ in range(num_layers)]
    b3 = jnp.zeros((1,), jnp.float32)
    return {"w1": w1, "w_hid": w_hid, "w3": w3, "biases": biases, "b3": b3}


def pack_params(raw):
    """Pack all weights/biases into one (rows, hid) array for a 2-operand kernel."""
    w1 = raw["w1"]
    in_size, hid = w1.shape
    num_layers = len(raw["biases"])
    in_p = _round_up(in_size, 8)
    small_rows = _round_up(2 + num_layers, 8)

    rows = [raw["w3"].reshape(1, hid),
            jnp.zeros((1, hid), jnp.float32).at[0, 0].set(raw["b3"][0])]
    rows += [b.reshape(1, hid) for b in raw["biases"]]
    pad = small_rows - (2 + num_layers)
    if pad:
        rows.append(jnp.zeros((pad, hid), jnp.float32))
    rows.append(jnp.pad(w1, ((0, in_p - in_size), (0, 0))))
    rows += list(raw["w_hid"])
    packed = jnp.concatenate(rows, axis=0)
    meta = dict(in_size=in_size, in_p=in_p, hid=hid,
                num_layers=num_layers, small_rows=small_rows)
    return packed, meta


def quncertainty_ref(x, raw, output_fn="softplus"):
    """Pure-JAX reference for correctness checks."""
    h = jnp.maximum(x @ raw["w1"] + raw["biases"][0][None, :], 0.0)
    for l, w in enumerate(raw["w_hid"]):
        h = jnp.maximum(h @ w + raw["biases"][l + 1][None, :], 0.0)
    out = h @ raw["w3"].T + raw["b3"][None, :]
    return _OUTPUT_FNS[output_fn](out) + MIN_VAR


if __name__ == "__main__":
    # Module-consistent shapes: obs_dim=24, action_dim=8 -> in_size=32;
    # hid_size=32; num_layers=2.
    obs_dim, action_dim, hid_size = 24, 8, 32
    in_size = obs_dim + action_dim

    key = jax.random.PRNGKey(0)
    k_params, k_x1, k_x2, k_p3 = jax.random.split(key, 4)

    raw = init_params(k_params, in_size, hid_size, num_layers=2)
    packed, meta = pack_params(raw)

    # 1) small batch (single grid step), all three output_fns
    x_small = jax.random.normal(k_x1, (8, in_size), dtype=jnp.float32)
    for fn in ("softplus", "huber_loss", "smooth_abs"):
        out = jax.block_until_ready(
            quncertainty_forward(x_small, packed, meta, output_fn=fn))
        ref = quncertainty_ref(x_small, raw, output_fn=fn)
        assert out.shape == (8, 1)
        assert jnp.allclose(out, ref, atol=1e-5, rtol=1e-5), fn

    # 2) larger, non-divisible batch: exercises the batch grid + padding path
    x_big = jax.random.normal(k_x2, (100, in_size), dtype=jnp.float32)
    out = jax.block_until_ready(
        quncertainty_forward(x_big, packed, meta, output_fn="softplus", block_b=64))
    ref = quncertainty_ref(x_big, raw, output_fn="softplus")
    assert out.shape == (100, 1)
    assert jnp.allclose(out, ref, atol=1e-5, rtol=1e-5)

    # 3) deeper network (num_layers=3): exercises the unrolled hidden-layer loop
    raw3 = init_params(k_p3, in_size, hid_size, num_layers=3)
    packed3, meta3 = pack_params(raw3)
    out = jax.block_until_ready(
        quncertainty_forward(x_small, packed3, meta3, output_fn="softplus"))
    ref = quncertainty_ref(x_small, raw3, output_fn="softplus")
    assert jnp.allclose(out, ref, atol=1e-5, rtol=1e-5)

    print("KERNEL_OK")
</pallas_src>

<mosaic_0001>
module attributes {stable_mosaic.version = 11 : i64} {
  func.func @_quncertainty_kernel(%arg0: i32, %arg1: memref<8x32xf32, #tpu.memory_space<vmem>>, %arg2: memref<72x32xf32, #tpu.memory_space<vmem>>, %arg3: memref<8x1xf32, #tpu.memory_space<vmem>>) attributes {dimension_semantics = [#tpu.dimension_semantics<parallel>], iteration_bounds = array<i64: 1>, scalar_prefetch = 0 : i64, scratch_operands = 0 : i64, tpu.core_type = #tpu.core_type<tc>, window_params = [{transform_indices = @transform_0, window_bounds = array<i64: 8, 32>}, {pipeline_mode = #tpu.pipeline_mode<synchronous>, transform_indices = @transform_1, window_bounds = array<i64: 72, 32>}, {transform_indices = @transform_2, window_bounds = array<i64: 8, 1>}]} {
    %c0 = arith.constant 0 : index
    %c0_0 = arith.constant 0 : index
    %0 = vector.load %arg2[%c0, %c0_0] : memref<72x32xf32, #tpu.memory_space<vmem>>, vector<1x32xf32>
    %c1 = arith.constant 1 : index
    %c0_1 = arith.constant 0 : index
    %1 = vector.load %arg2[%c1, %c0_1] : memref<72x32xf32, #tpu.memory_space<vmem>>, vector<1x1xf32>
    %c0_2 = arith.constant 0 : index
    %c0_3 = arith.constant 0 : index
    %2 = vector.load %arg1[%c0_2, %c0_3] : memref<8x32xf32, #tpu.memory_space<vmem>>, vector<8x32xf32>
    %c8 = arith.constant 8 : index
    %c0_4 = arith.constant 0 : index
    %3 = vector.load %arg2[%c8, %c0_4] : memref<72x32xf32, #tpu.memory_space<vmem>>, vector<32x32xf32>
    %cst = arith.constant dense<0.000000e+00> : vector<8x32xf32>
    %4 = tpu.matmul %2, %3, %cst {dimension_numbers = #tpu.dot_dimension_numbers<[1], [0], [0], [1], [0, 0, 1, 1], [], []>} : vector<8x32xf32>, vector<32x32xf32>, vector<8x32xf32> -> vector<8x32xf32>
    %c2 = arith.constant 2 : index
    %c0_5 = arith.constant 0 : index
    %5 = vector.load %arg2[%c2, %c0_5] : memref<72x32xf32, #tpu.memory_space<vmem>>, vector<1x32xf32>
    %6 = vector.broadcast %5 : vector<1x32xf32> to vector<8x32xf32>
    %7 = arith.addf %4, %6 : vector<8x32xf32>
    %cst_6 = arith.constant 0.000000e+00 : f32
    %8 = vector.broadcast %cst_6 : f32 to vector<8x32xf32>
    %9 = arith.maximumf %7, %8 : vector<8x32xf32>
    %c40 = arith.constant 40 : index
    %c0_7 = arith.constant 0 : index
    %10 = vector.load %arg2[%c40, %c0_7] : memref<72x32xf32, #tpu.memory_space<vmem>>, vector<32x32xf32>
    %cst_8 = arith.constant dense<0.000000e+00> : vector<8x32xf32>
    %11 = tpu.matmul %9, %10, %cst_8 {dimension_numbers = #tpu.dot_dimension_numbers<[1], [0], [0], [1], [0, 0, 1, 1], [], []>} : vector<8x32xf32>, vector<32x32xf32>, vector<8x32xf32> -> vector<8x32xf32>
    %c3 = arith.constant 3 : index
    %c0_9 = arith.constant 0 : index
    %12 = vector.load %arg2[%c3, %c0_9] : memref<72x32xf32, #tpu.memory_space<vmem>>, vector<1x32xf32>
    %13 = vector.broadcast %12 : vector<1x32xf32> to vector<8x32xf32>
    %14 = arith.addf %11, %13 : vector<8x32xf32>
    %cst_10 = arith.constant 0.000000e+00 : f32
    %15 = vector.broadcast %cst_10 : f32 to vector<8x32xf32>
    %16 = arith.maximumf %14, %15 : vector<8x32xf32>
    %17 = vector.broadcast %0 : vector<1x32xf32> to vector<8x32xf32>
    %18 = arith.mulf %16, %17 : vector<8x32xf32>
    %cst_11 = arith.constant dense<0.000000e+00> : vector<8xf32>
    %19 = vector.multi_reduction <add>, %18, %cst_11 [1] : vector<8x32xf32> to vector<8xf32>
    %20 = vector.shape_cast %19 : vector<8xf32> to vector<8x1xf32>
    %21 = vector.broadcast %1 : vector<1x1xf32> to vector<8x1xf32>
    %22 = arith.addf %20, %21 : vector<8x1xf32>
    %cst_12 = arith.constant 0.000000e+00 : f32
    %23 = vector.broadcast %cst_12 : f32 to vector<8x1xf32>
    %24 = arith.maximumf %22, %23 : vector<8x1xf32>
    %25 = math.absf %22 : vector<8x1xf32>
    %cst_13 = arith.constant 0.000000e+00 : f32
    %26 = vector.broadcast %cst_13 : f32 to vector<8x1xf32>
    %27 = arith.subf %26, %25 : vector<8x1xf32>
    %28 = math.exp %27 : vector<8x1xf32>
    %cst_14 = arith.constant 1.000000e+00 : f32
    %29 = vector.broadcast %cst_14 : f32 to vector<8x1xf32>
    %30 = arith.addf %29, %28 : vector<8x1xf32>
    %31 = math.log %30 : vector<8x1xf32>
    %32 = arith.addf %24, %31 : vector<8x1xf32>
    %cst_15 = arith.constant 1.000000e-01 : f32
    %33 = vector.broadcast %cst_15 : f32 to vector<8x1xf32>
    %34 = arith.addf %32, %33 : vector<8x1xf32>
    %c0_16 = arith.constant 0 : index
    %c0_17 = arith.constant 0 : index
    %35 = vector.load %arg3[%c0_16, %c0_17] : memref<8x1xf32, #tpu.memory_space<vmem>>, vector<8x1xf32>
    tpu.vector_store %arg3[%c0_16, %c0_17], %34 {strides = array<i32>} : memref<8x1xf32, #tpu.memory_space<vmem>>, vector<8x1xf32>,
    return
  }
  func.func @transform_0(%arg0: i32) -> (i32, i32) {
    %c0_i32 = arith.constant 0 : i32
    %c0_i32_0 = arith.constant 0 : i32
    return %arg0, %c0_i32 : i32, i32
  }
  func.func @transform_1(%arg0: i32) -> (i32, i32) {
    %c0_i32 = arith.constant 0 : i32
    %c0_i32_0 = arith.constant 0 : i32
    %c0_i32_1 = arith.constant 0 : i32
    return %c0_i32, %c0_i32_0 : i32, i32
  }
  func.func @transform_2(%arg0: i32) -> (i32, i32) {
    %c0_i32 = arith.constant 0 : i32
    %c0_i32_0 = arith.constant 0 : i32
    return %arg0, %c0_i32 : i32, i32
  }
}

</mosaic_0001>

<bundles_post_ra>
// kernel: tpu_custom_call.1
= control target key start
LH: loop header
LB: loop body
LE: loop exit
PB: predicated region body
PF: predicated region fallthrough
CT: control target
= control target key end

     0   :  { %v267_v0 = vmov 0.0|0.0   ;;  %vm268_vm0 = vmmov 0   ;;  %v269_v4 = vmov 0.0   ;;  %vm23_vm1 = vcmask 261120   ;;  %s330_s1 = inlined_call_operand.vmem [shape: f32[72,32], index: 1, kind: input, shape index: {}]   ;;  %s331_s0 = inlined_call_operand.vmem [shape: f32[8,32], index: 0, kind: input, shape index: {}]   ;;  %s332_s2 = inlined_call_operand.vmem [shape: f32[8,1], index: 2, kind: output, shape index: {}]  }
   0x1   :  { %248 = vmatprep.subr.bf16.mxu0 %v267_v0  ;;  %v14_v1 = vld [vmem:[%s330_s1 + $0x8] sm:$0xff]  ;;  %v15_v2 = vld [vmem:[%s330_s1 + $0x10] sm:$0xff]  ;;  %v16_v3 = vld [vmem:[%s330_s1 + $0x18] sm:$0xff]  ;;  %234 = vmatprep.mubr.msk.f32.mxu0 %vm268_vm0, %v269_v4  ;;  %vm204_vm2 = vcmask 7168  }
   0x2   :  { %v249_v5 = vpack.c.bf16 %v15_v2, %v14_v1  ;;  %v17_v6 = vld [vmem:[%s330_s1 + $0x20] sm:$0xff]  ;;  %254 = vmatprep.subr.bf16.mxu1 %v267_v0  ;;  %v98_v7 = vld [vmem:[%s330_s1 + $0x28] sm:$0xff]  ;;  %245 = vmatprep.mubr.msk.f32.mxu1 %vm268_vm0, %v269_v4  ;;  %v99_v8 = vld [vmem:[%s330_s1 + $0x30] sm:$0xff] }
   0x3   :  { %v252_v9 = vpack.c.bf16 %v17_v6, %v16_v3  ;;  %v255_v10 = vpack.c.bf16 %v99_v8, %v98_v7  ;;  %v13_v11 = vld [vmem:[%s331_s0] sm:$0xff]  ;;  %v100_v12 = vld [vmem:[%s330_s1 + $0x38] sm:$0xff] }
   0x4   :  { %250 = vmatpush3.bf16.msra.mxu0 %v249_v5  ;;  %v101_v13 = vld [vmem:[%s330_s1 + $0x40] sm:$0xff] }
   0x5   :  { %251 = vmatprep.subr.bf16.mxu0 %v267_v0  ;;  %256 = vmatpush3.bf16.msra.mxu1 %v255_v10  ;;  %v258_v14 = vpack.c.bf16 %v101_v13, %v100_v12  ;;  %v210_v15 = vld [vmem:[%s330_s1 + $0x2] ss:$0 sm:$0xff]  ;;  %v212_v20 = vld [vmem:[%s330_s1 + $0x3] ss:$0 sm:$0xff]  ;;  %v214_v24 = vld [vmem:[%s330_s1] ss:$0 sm:$0xff] }
   0x6   :  { %257 = vmatprep.subr.bf16.mxu1 %v267_v0  ;;  %v215_v28 = vld [vmem:[%s330_s1 + $0x1] ss:$0 sm:$0xff] }
   0x8   :  { %253 = vmatpush3.bf16.msra.mxu0 %v252_v9 }
   0x9   :  { %259 = vmatpush3.bf16.msra.mxu1 %v258_v14 }
   0xb   :  { %235 = vmatmul.mubr.msk.f32.vlgmr.msra.gmra.mrb[0].mxu0 %vm23_vm1, %v13_v11 }
  0xde   :  { %v93_v16 = vpop.f32.mrb[0].mxu0 }
  0xdf   :  { %v94_v17 = vadd.f32 %v210_v15, %v93_v16  ;;  %v236_v18 = vpop.f32.mrb[1].mxu0 }
  0xe1   :  { %v97_v19 = vmax.f32 %v94_v17, 0.0 }
  0xe3   :  { %246 = vmatmul.mubr.msk.f32.vlgmr.msra.gmra.mrb[0].mxu1 %vm23_vm1, %v97_v19 }
 0x1b6   :  { %v176_v21 = vpop.f32.mrb[0].mxu1 }
 0x1b7   :  { %v177_v22 = vadd.f32 %v212_v20, %v176_v21  ;;  %v247_v23 = vpop.f32.mrb[1].mxu1 }
 0x1b9   :  { %v180_v25 = vmax.f32 %v177_v22, 0.0 }
 0x1bb   :  { %v185_v26 = vmul.f32 %v214_v24, %v180_v25 }
 0x1bd   :  { %v186_v27 = vsel %vm23_vm1, %v185_v26, 0.0 }
 0x1be   :  { %187 = vadd.xlane.f32.xlu0 %v186_v27 }
 0x24b   :  { %v188_v29 = vpop.xlane.xlu0 %187 }
 0x24c   :  { %v193_v30 = vadd.f32 %v215_v28, %v188_v29 }
 0x24e   :  { %v195_v31 = vand.u32 2147483647, %v193_v30  ;;  %v194_v37 = vmax.f32 %v193_v30, 0.0 }
 0x250   :  { %v196_v32 = vsub.f32 0.0, %v195_v31 }
 0x252   :  { %v197_v33 = vmul.f32 1.442695, %v196_v32 }
 0x254   :  { %263 = vpow2.f32 %v197_v33 }
 0x25e   :  { %v264_v34 = vpop.eup %263 }
 0x25f   :  { %v199_v35 = vadd.f32 1.0, %v264_v34 }
 0x261   :  { %265 = vlog2.f32 %v199_v35 }
 0x26b   :  { %v266_v36 = vpop.eup %265 }
 0x26c   :  { %v201_v38 = vmul.f32 0.6931472, %v266_v36 }
 0x26e   :  { %v202_v39 = vadd.f32 %v201_v38, %v194_v37 }
 0x270   :  { %v203_v40 = vadd.f32 0.1, %v202_v39 }
 0x272   :  { %205 = vst.msk [vmem:[%s332_s2] sm:$0xff] %vm204_vm2, %v203_v40 }

</bundles_post_ra>
